<compile_context>
chip_gen: v7x
topology: tpu7x:2x2x1
jax: 0.10.0
libtpu: 0.0.40
codegen_flags: <defaults>
</compile_context>

<pallas_src>
import jax
import jax.numpy as jnp
from jax import lax
from jax.experimental import pallas as pl
from jax.experimental.pallas import tpu as pltpu

BN_EPS = 1e-5


def mlp_kernel(x_ref, w1_ref, b1_ref, w2_ref, b2_ref, w3_ref, b3_ref, o_ref):
    x = x_ref[...]

    # Linear1 -> ReLU   (BN1 has been folded into w2/b2 in the wrapper)
    h = jnp.dot(x, w1_ref[...], preferred_element_type=jnp.float32) + b1_ref[...]
    h = jnp.maximum(h, 0.0)

    # (BN1-folded) Linear2 -> ReLU   (BN2 has been folded into w3/b3)
    h = jnp.dot(h, w2_ref[...], preferred_element_type=jnp.float32) + b2_ref[...]
    h = jnp.maximum(h, 0.0)

    # Output head Linear(H2 -> 1), computed lane-dense:
    #   w3_row [1, H2] contracted against h [block_b, H2] on its last dim
    #   -> [1, block_b]  (one MXU pass with M=1; the MXU slot has plenty of
    #   slack here, and this avoids ~block_b/8 masked vst.msk stores that a
    #   [block_b, 1] output block would force).
    head = lax.dot_general(
        w3_ref[...], h,
        dimension_numbers=(((1,), (1,)), ((), ())),
        preferred_element_type=jnp.float32,
    ) + b3_ref[...]                                   # [1, block_b]

    o_ref[...] = head.reshape(o_ref.shape)            # leading-dim-only reshape (free)

    # TODO(synk): training-mode Dropout (stochastic mask) intentionally omitted;
    # eval mode is identity.


def _round_up(n, m):
    return ((n + m - 1) // m) * m


def fold_bn_into_next_linear(params):
    """Fold eval-mode BN affines into the following Linear (exact in f32).

    Call ONCE when parameters are set (hoisted out of the forward path).
    Returns (w1, b1, w2f, b2f, w3_row, b3f) where:
      w2f = diag(scale1) @ w2,  b2f = shift1 @ w2 + b2
      w3f = diag(scale2) @ w3,  b3f = shift2 @ w3 + b3,  w3_row = w3f.T  ([1, H2])
    """
    (w1, b1, g1, be1, m1, v1,
     w2, b2, g2, be2, m2, v2,
     w3, b3) = params

    scale1 = g1 * lax.rsqrt(v1 + BN_EPS)          # [1, H1]
    shift1 = be1 - m1 * scale1                    # [1, H1]
    scale2 = g2 * lax.rsqrt(v2 + BN_EPS)          # [1, H2]
    shift2 = be2 - m2 * scale2                    # [1, H2]

    w2f = w2 * scale1.reshape(-1, 1)              # [H1, H2]
    b2f = shift1 @ w2 + b2                        # [1, H2]

    w3f = w3 * scale2.reshape(-1, 1)              # [H2, 1]
    b3f = shift2 @ w3 + b3                        # [1, 1]
    w3_row = w3f.reshape(1, -1)                   # [1, H2]

    return w1, b1, w2f, b2f, w3_row, b3f


def simple_nn_regressor(x, folded_params, *, block_b=1024):
    """Runs the fused MLP kernel, tiled over the batch dimension.

    `folded_params` is the output of fold_bn_into_next_linear (precompute it
    once per parameter set, not per forward call).

    Arbitrary B is handled without padding the input: the grid is
    pl.cdiv(B, block_b_eff) and the last (possibly partial) input block is
    handled by Pallas; garbage rows land in the tail of the oversized output
    slab and are sliced off.
    """
    B, F = x.shape
    w1, b1, w2f, b2f, w3_row, b3f = folded_params
    H1 = w1.shape[1]
    H2 = w2f.shape[1]

    # Batch tile: multiple of 8 (sublane constraint), clamped for tiny batches,
    # and capped at ceil(B/2) when B >= 16 so the grid has >= 2 steps and both
    # of v7x's TensorCores get work (no measurable cost on v5e/v6e).
    block_b_eff = min(block_b, _round_up(B, 8))
    if B >= 16:
        block_b_eff = min(block_b_eff, _round_up(pl.cdiv(B, 2), 8))
    block_b_eff = max(8, _round_up(block_b_eff, 8))
    num_tiles = pl.cdiv(B, block_b_eff)

    # Per-step VMEM budget (double-buffered x + weights + lane-dense out):
    # ~2*block_b*F*4 + (F*H1 + H1*H2)*4 + 2*block_b*4 bytes — far under the
    # 32 MiB scoped default on every generation (incl. v7x) at these dims.

    full = lambda arr: pl.BlockSpec(arr.shape, lambda i: (0,) * arr.ndim)

    param_bytes = sum(a.size * a.dtype.itemsize
                      for a in (w1, b1, w2f, b2f, w3_row, b3f))
    cost = pl.CostEstimate(
        flops=2 * B * (F * H1 + H1 * H2 + H2),
        transcendentals=0,
        bytes_accessed=x.size * x.dtype.itemsize + param_bytes + B * 4,
    )

    out = pl.pallas_call(
        mlp_kernel,
        out_shape=jax.ShapeDtypeStruct((num_tiles, 1, block_b_eff), jnp.float32),
        grid=(num_tiles,),
        in_specs=[
            pl.BlockSpec((block_b_eff, F), lambda i: (i, 0)),   # x tile
            full(w1), full(b1),
            full(w2f), full(b2f),
            full(w3_row), full(b3f),
        ],
        out_specs=pl.BlockSpec((1, 1, block_b_eff), lambda i: (i, 0, 0)),
        compiler_params=pltpu.CompilerParams(
            dimension_semantics=("parallel",),
        ),
        cost_estimate=cost,
    )(x, w1, b1, w2f, b2f, w3_row, b3f)

    # Lane-dense slab -> [B, 1] column (cheap: 4 bytes per row).
    return out.reshape(-1)[:B].reshape(B, 1)


def make_params(key, input_dim, hidden_dims=(128, 64)):
    """Deterministic synthetic parameters (weights as [in, out], BN params as [1, dim])."""
    dims = [input_dim] + list(hidden_dims)
    keys = jax.random.split(key, 16)
    ki = iter(keys)
    params = []
    for layer in range(len(hidden_dims)):
        din, dout = dims[layer], dims[layer + 1]
        w = jax.random.normal(next(ki), (din, dout), jnp.float32) * 0.05
        b = jax.random.normal(next(ki), (1, dout), jnp.float32) * 0.01
        gamma = 1.0 + 0.1 * jax.random.normal(next(ki), (1, dout), jnp.float32)
        beta = 0.1 * jax.random.normal(next(ki), (1, dout), jnp.float32)
        rmean = 0.1 * jax.random.normal(next(ki), (1, dout), jnp.float32)
        rvar = jax.random.uniform(next(ki), (1, dout), jnp.float32, 0.5, 1.5)
        params.extend([w, b, gamma, beta, rmean, rvar])
    # final Linear(prev_dim, 1)
    w3 = jax.random.normal(next(ki), (dims[-1], 1), jnp.float32) * 0.05
    b3 = jax.random.normal(next(ki), (1, 1), jnp.float32) * 0.01
    params.extend([w3, b3])
    return tuple(params)


def reference_forward(x, params):
    """Pure-JAX reference mirroring PyTorch eval-mode forward."""
    (w1, b1, g1, be1, m1, v1,
     w2, b2, g2, be2, m2, v2,
     w3, b3) = params
    h = jnp.maximum(x @ w1 + b1, 0.0)
    h = (h - m1) / jnp.sqrt(v1 + BN_EPS) * g1 + be1
    h = jnp.maximum(h @ w2 + b2, 0.0)
    h = (h - m2) / jnp.sqrt(v2 + BN_EPS) * g2 + be2
    return h @ w3 + b3


if __name__ == "__main__":
    key = jax.random.PRNGKey(0)
    k_x, k_p = jax.random.split(key)

    B, INPUT_DIM = 16, 32
    x = jax.random.normal(k_x, (B, INPUT_DIM), jnp.float32)
    params = make_params(k_p, INPUT_DIM, hidden_dims=(128, 64))

    # Fold BN into the next Linear ONCE (hoisted out of the forward path).
    folded = fold_bn_into_next_linear(params)
    folded = tuple(jax.block_until_ready(p) for p in folded)

    out = simple_nn_regressor(x, folded, block_b=1024)
    out = jax.block_until_ready(out)

    ref = reference_forward(x, params)
    assert out.shape == (B, 1), out.shape
    assert jnp.allclose(out, ref, atol=1e-4, rtol=1e-4), "mismatch vs reference"

    # Non-multiple batch size exercises the partial-last-block path (no padding).
    B2 = 37
    x2 = jax.random.normal(k_x, (B2, INPUT_DIM), jnp.float32)
    out2 = jax.block_until_ready(simple_nn_regressor(x2, folded, block_b=1024))
    ref2 = reference_forward(x2, params)
    assert out2.shape == (B2, 1), out2.shape
    assert jnp.allclose(out2, ref2, atol=1e-4, rtol=1e-4), "mismatch vs reference (partial block)"

    print("KERNEL_OK")
</pallas_src>

<mosaic_0001>
module attributes {stable_mosaic.version = 11 : i64} {
  func.func @mlp_kernel(%arg0: i32, %arg1: memref<8x32xf32, #tpu.memory_space<vmem>>, %arg2: memref<32x128xf32, #tpu.memory_space<vmem>>, %arg3: memref<1x128xf32, #tpu.memory_space<vmem>>, %arg4: memref<128x64xf32, #tpu.memory_space<vmem>>, %arg5: memref<1x64xf32, #tpu.memory_space<vmem>>, %arg6: memref<1x64xf32, #tpu.memory_space<vmem>>, %arg7: memref<1x1xf32, #tpu.memory_space<vmem>>, %arg8: memref<1x1x8xf32, #tpu.memory_space<vmem>>) attributes {dimension_semantics = [#tpu.dimension_semantics<parallel>], iteration_bounds = array<i64: 2>, scalar_prefetch = 0 : i64, scratch_operands = 0 : i64, tpu.core_type = #tpu.core_type<tc>, window_params = [{transform_indices = @transform_0, window_bounds = array<i64: 8, 32>}, {pipeline_mode = #tpu.pipeline_mode<synchronous>, transform_indices = @transform_1, window_bounds = array<i64: 32, 128>}, {pipeline_mode = #tpu.pipeline_mode<synchronous>, transform_indices = @transform_2, window_bounds = array<i64: 1, 128>}, {pipeline_mode = #tpu.pipeline_mode<synchronous>, transform_indices = @transform_3, window_bounds = array<i64: 128, 64>}, {pipeline_mode = #tpu.pipeline_mode<synchronous>, transform_indices = @transform_4, window_bounds = array<i64: 1, 64>}, {pipeline_mode = #tpu.pipeline_mode<synchronous>, transform_indices = @transform_5, window_bounds = array<i64: 1, 64>}, {pipeline_mode = #tpu.pipeline_mode<synchronous>, transform_indices = @transform_6, window_bounds = array<i64: 1, 1>}, {transform_indices = @transform_7, window_bounds = array<i64: 1, 1, 8>}]} {
    %c0 = arith.constant 0 : index
    %c0_0 = arith.constant 0 : index
    %0 = vector.load %arg1[%c0, %c0_0] : memref<8x32xf32, #tpu.memory_space<vmem>>, vector<8x32xf32>
    %c0_1 = arith.constant 0 : index
    %c0_2 = arith.constant 0 : index
    %1 = vector.load %arg2[%c0_1, %c0_2] : memref<32x128xf32, #tpu.memory_space<vmem>>, vector<32x128xf32>
    %cst = arith.constant dense<0.000000e+00> : vector<8x128xf32>
    %2 = tpu.matmul %0, %1, %cst {dimension_numbers = #tpu.dot_dimension_numbers<[1], [0], [0], [1], [0, 0, 1, 1], [], []>} : vector<8x32xf32>, vector<32x128xf32>, vector<8x128xf32> -> vector<8x128xf32>
    %c0_3 = arith.constant 0 : index
    %c0_4 = arith.constant 0 : index
    %3 = vector.load %arg3[%c0_3, %c0_4] : memref<1x128xf32, #tpu.memory_space<vmem>>, vector<1x128xf32>
    %4 = vector.broadcast %3 : vector<1x128xf32> to vector<8x128xf32>
    %5 = arith.addf %2, %4 : vector<8x128xf32>
    %cst_5 = arith.constant 0.000000e+00 : f32
    %6 = vector.broadcast %cst_5 : f32 to vector<8x128xf32>
    %7 = arith.maximumf %5, %6 : vector<8x128xf32>
    %c0_6 = arith.constant 0 : index
    %c0_7 = arith.constant 0 : index
    %8 = vector.load %arg4[%c0_6, %c0_7] : memref<128x64xf32, #tpu.memory_space<vmem>>, vector<128x64xf32>
    %cst_8 = arith.constant dense<0.000000e+00> : vector<8x64xf32>
    %9 = tpu.matmul %7, %8, %cst_8 {dimension_numbers = #tpu.dot_dimension_numbers<[1], [0], [0], [1], [0, 0, 1, 1], [], []>} : vector<8x128xf32>, vector<128x64xf32>, vector<8x64xf32> -> vector<8x64xf32>
    %c0_9 = arith.constant 0 : index
    %c0_10 = arith.constant 0 : index
    %10 = vector.load %arg5[%c0_9, %c0_10] : memref<1x64xf32, #tpu.memory_space<vmem>>, vector<1x64xf32>
    %11 = vector.broadcast %10 : vector<1x64xf32> to vector<8x64xf32>
    %12 = arith.addf %9, %11 : vector<8x64xf32>
    %cst_11 = arith.constant 0.000000e+00 : f32
    %13 = vector.broadcast %cst_11 : f32 to vector<8x64xf32>
    %14 = arith.maximumf %12, %13 : vector<8x64xf32>
    %c0_12 = arith.constant 0 : index
    %c0_13 = arith.constant 0 : index
    %15 = vector.load %arg6[%c0_12, %c0_13] : memref<1x64xf32, #tpu.memory_space<vmem>>, vector<1x64xf32>
    %cst_14 = arith.constant dense<0.000000e+00> : vector<1x8xf32>
    %16 = tpu.matmul %15, %14, %cst_14 {dimension_numbers = #tpu.dot_dimension_numbers<[1], [1], [0], [0], [0, 0, 1, 0], [], []>} : vector<1x64xf32>, vector<8x64xf32>, vector<1x8xf32> -> vector<1x8xf32>
    %c0_15 = arith.constant 0 : index
    %c0_16 = arith.constant 0 : index
    %17 = vector.load %arg7[%c0_15, %c0_16] : memref<1x1xf32, #tpu.memory_space<vmem>>, vector<1x1xf32>
    %18 = vector.broadcast %17 : vector<1x1xf32> to vector<1x8xf32>
    %19 = arith.addf %16, %18 : vector<1x8xf32>
    %20 = vector.shape_cast %19 : vector<1x8xf32> to vector<1x1x8xf32>
    %c0_17 = arith.constant 0 : index
    %c0_18 = arith.constant 0 : index
    %c0_19 = arith.constant 0 : index
    %21 = vector.load %arg8[%c0_17, %c0_18, %c0_19] : memref<1x1x8xf32, #tpu.memory_space<vmem>>, vector<1x1x8xf32>
    tpu.vector_store %arg8[%c0_17, %c0_18, %c0_19], %20 {strides = array<i32>} : memref<1x1x8xf32, #tpu.memory_space<vmem>>, vector<1x1x8xf32>,
    return
  }
  func.func @transform_0(%arg0: i32) -> (i32, i32) {
    %c0_i32 = arith.constant 0 : i32
    %c0_i32_0 = arith.constant 0 : i32
    return %arg0, %c0_i32 : i32, i32
  }
  func.func @transform_1(%arg0: i32) -> (i32, i32) {
    %c0_i32 = arith.constant 0 : i32
    %c0_i32_0 = arith.constant 0 : i32
    %c0_i32_1 = arith.constant 0 : i32
    return %c0_i32, %c0_i32_0 : i32, i32
  }
  func.func @transform_2(%arg0: i32) -> (i32, i32) {
    %c0_i32 = arith.constant 0 : i32
    %c0_i32_0 = arith.constant 0 : i32
    %c0_i32_1 = arith.constant 0 : i32
    return %c0_i32, %c0_i32_0 : i32, i32
  }
  func.func @transform_3(%arg0: i32) -> (i32, i32) {
    %c0_i32 = arith.constant 0 : i32
    %c0_i32_0 = arith.constant 0 : i32
    %c0_i32_1 = arith.constant 0 : i32
    return %c0_i32, %c0_i32_0 : i32, i32
  }
  func.func @transform_4(%arg0: i32) -> (i32, i32) {
    %c0_i32 = arith.constant 0 : i32
    %c0_i32_0 = arith.constant 0 : i32
    %c0_i32_1 = arith.constant 0 : i32
    return %c0_i32, %c0_i32_0 : i32, i32
  }
  func.func @transform_5(%arg0: i32) -> (i32, i32) {
    %c0_i32 = arith.constant 0 : i32
    %c0_i32_0 = arith.constant 0 : i32
    %c0_i32_1 = arith.constant 0 : i32
    return %c0_i32, %c0_i32_0 : i32, i32
  }
  func.func @transform_6(%arg0: i32) -> (i32, i32) {
    %c0_i32 = arith.constant 0 : i32
    %c0_i32_0 = arith.constant 0 : i32
    %c0_i32_1 = arith.constant 0 : i32
    return %c0_i32, %c0_i32_0 : i32, i32
  }
  func.func @transform_7(%arg0: i32) -> (i32, i32, i32) {
    %c0_i32 = arith.constant 0 : i32
    %c0_i32_0 = arith.constant 0 : i32
    %c0_i32_1 = arith.constant 0 : i32
    return %arg0, %c0_i32, %c0_i32_0 : i32, i32, i32
  }
}

</mosaic_0001>

<bundles_post_ra>
// kernel: tpu_custom_call.1
= control target key start
LH: loop header
LB: loop body
LE: loop exit
PB: predicated region body
PF: predicated region fallthrough
CT: control target
= control target key end

     0   :  { %s1060_s0 = inlined_call_operand.vmem [shape: f32[16,32], index: 0, kind: input, shape index: {}]   ;;  %s1061_s1 = inlined_call_operand.vmem [shape: f32[32,128], index: 1, kind: input, shape index: {}]   ;;  %s1062_s2 = inlined_call_operand.vmem [shape: f32[1,128], index: 2, kind: input, shape index: {}]   ;;  %s1063_s3 = inlined_call_operand.vmem [shape: f32[128,64], index: 3, kind: input, shape index: {}]   ;;  %s1064_s4 = inlined_call_operand.vmem [shape: f32[1,64], index: 4, kind: input, shape index: {}]   ;;  %s1065_s5 = inlined_call_operand.vmem [shape: f32[1,64], index: 5, kind: input, shape index: {}]   ;;  %s1066_s6 = inlined_call_operand.<no memory space> [shape: f32[1,1], index: 6, kind: input, shape index: {}]   ;;  %s1067_s7 = inlined_call_operand.hbm [shape: f32[2,1,8], index: 7, kind: output, shape index: {}]  }
   0x1   :  { %v12_v0 = vstv %s1066_s6 }
   0x2   :  { %13 = vst [vmem:[#allocation2] sm:$0x1] %v12_v0 }
   0x3   :  { %14 = vsyncpa [#allocation4], 0 }
   0x4   :  { %16 = vsyncpa [#allocation4 + $0x1], 0  ;;  %s888_s26 = smov 0   ;;  %s890_s27 = smov 0  }
   0x5   :  { %s892_s28 = smov 0   ;;  %s894_s29 = smov 0  }
   0x6 LB: > { %s909_s6 = sadd.s32 4294967295, %s838_s29   ;;  %s614_s30 = sadd.s32 4294967294, %s838_s29   ;;  %s838_s29 = sphi %s894_s29, %s1073_s29   ;;  %s834_s28 = sphi %s892_s28, %s1072_s28   ;;  %s830_s27 = sphi %s890_s27, %s1071_s27   ;;  %s826_s26 = sphi %s888_s26, %s1070_s26  }
   0x7   : > { %s913_s8 = sadd.s32 1, %s838_s29   ;;  %s181_s9 = sadd.s32 1, %s834_s28 }
   0x8   : > { %s178_s10 = ssub.s32 %s838_s29, %s913_s8  ;;  %p191_p0 = scmp.ne.s32.totalorder %s834_s28, %s830_s27 }
   0x9   : > { %p179_p1 = scmp.eq.s32.totalorder %s178_s10, 0  ;;  %p192_p2 = scmp.eq.s32.totalorder %s909_s6, 1 }
   0xa   : > { %p197_p3 = scmp.ne.s32.totalorder %s830_s27, %s826_s26  ;;  %p198_p4 = scmp.eq.s32.totalorder %s614_s30, 1 }
   0xb   : > { %s924_s11 = scalar_select %p179_p1, %s834_s28, %s181_s9  }
   0xc   : > { %p926_p5 = por %p192_p2, %p191_p0  ;;  %p930_p6 = por %p198_p4, %p197_p3 }
   0xd   : > { %p617_p7 = scmp.ge.s32.totalorder %s838_s29, 1  ;;  %p241_p8 = scmp.lt.s32.totalorder %s838_s29, 3 }
   0xf   : > { %p242_p9 = pnand %p617_p7, %p241_p8 }
  0x10   : > { %v276_v1 = vld [vmem:[%s1061_s1] sm:$0xff] (!%p242_p9)  ;;  %v277_v2 = vld [vmem:[%s1061_s1 + $0x8] sm:$0xff] (!%p242_p9)  ;;  %v278_v3 = vld [vmem:[%s1061_s1 + $0x10] sm:$0xff] (!%p242_p9)  ;;  %v840_v4 = vmov (!%p242_p9), 0.0|0.0   ;;  %vm841_vm0 = vmmov (!%p242_p9), 0   ;;  %v842_v7 = vmov (!%p242_p9), 0.0   ;;  %v463_v47 = vlaneseq (!%p242_p9) }
  0x11   : > { %245 = sbr.rel (%p242_p9) target bundleno = 692 (0x2b4), region = 48  ;;  %702 = vmatprep.subr.bf16.mxu0 (!%p242_p9), %v840_v4  ;;  %v703_v5 = vpack.c.bf16 (!%p242_p9), %v277_v2, %v276_v1  ;;  %v279_v6 = vld [vmem:[%s1061_s1 + $0x18] sm:$0xff] (!%p242_p9)  ;;  %659 = vmatprep.mubr.msk.f32.mxu0 (!%p242_p9), %vm841_vm0, %v842_v7  ;;  %p271_p10 = scmp.lt.s32.totalorder (!%p242_p9), %s909_s6, 1  ;;  %v362_v8 = vld [vmem:[%s1063_s3] sm:$0xff] (!%p242_p9)  ;;  %v363_v9 = vld [vmem:[%s1063_s3 + $0x8] sm:$0xff] (!%p242_p9)  ;;  %vm287_vm1 = vcmask (!%p242_p9), 261120  }
  0x12   : > { %708 = vmatprep.subr.bf16.mxu1 (!%p242_p9), %v840_v4  ;;  %v709_v10 = vpack.c.bf16 (!%p242_p9), %v363_v9, %v362_v8  ;;  %v364_v11 = vld [vmem:[%s1063_s3 + $0x10] sm:$0xff] (!%p242_p9)  ;;  %v365_v12 = vld [vmem:[%s1063_s3 + $0x18] sm:$0xff] (!%p242_p9)  ;;  %694 = vmatprep.mubr.msk.f32.mxu1 (!%p242_p9), %vm841_vm0, %v842_v7  ;;  %v706_v13 = vpack.c.bf16 (!%p242_p9), %v279_v6, %v278_v3  ;;  %v366_v15 = vld [vmem:[%s1063_s3 + $0x20] sm:$0xff] (!%p242_p9)  ;;  %v843_v40 = vmov (!%p242_p9), 0   ;;  %vm467_vm2 = vcmask (!%p242_p9), 523264   ;;  %s269_s20 = sand.u32 (!%p242_p9), 1, %s830_s27  }
  0x13   : > { %704 = vmatpush3.bf16.msra.mxu0 (!%p242_p9), %v703_v5  ;;  %v712_v14 = vpack.c.bf16 (!%p242_p9), %v365_v12, %v364_v11  ;;  %v367_v16 = vld [vmem:[%s1063_s3 + $0x28] sm:$0xff] (!%p242_p9)  ;;  %v368_v19 = vld [vmem:[%s1063_s3 + $0x30] sm:$0xff] (!%p242_p9)  ;;  %v369_v20 = vld [vmem:[%s1063_s3 + $0x38] sm:$0xff] (!%p242_p9)  ;;  %775 = vset.pattern.permute.xlu0 (!%p242_p9), %v843_v40  ;;  %v464_v48 = vshrl.u32 (!%p242_p9), %v463_v47, 7  ;;  %s624_s21 = sshll.u32 (!%p242_p9), %s909_s6, 4  ;;  %s270_s22 = scalar_lea.vmem (!%p242_p9), [#allocation3], %s269_s20 }
  0x14   : > { %705 = vmatprep.subr.bf16.mxu0 (!%p242_p9), %v840_v4  ;;  %710 = vmatpush3.bf16.msra.mxu1 (!%p242_p9), %v709_v10  ;;  %v715_v18 = vpack.c.bf16 (!%p242_p9), %v367_v16, %v366_v15  ;;  %v718_v21 = vpack.c.bf16 (!%p242_p9), %v369_v20, %v368_v19  ;;  %v370_v22 = vld [vmem:[%s1063_s3 + $0x40] sm:$0xff] (!%p242_p9)  ;;  %v371_v23 = vld [vmem:[%s1063_s3 + $0x48] sm:$0xff] (!%p242_p9)  ;;  %v372_v25 = vld [vmem:[%s1063_s3 + $0x50] sm:$0xff] (!%p242_p9)  ;;  %vm544_vm3 = vcmask (!%p242_p9), 57344   ;;  %s1018_s30 = scalar_lea.hbm (!%p242_p9), %s1067_s7, %s624_s21  ;;  %s547_s9 = scalar_lea.sflag (!%p242_p9), [#allocation4], %s269_s20 }
  0x15   : > { %711 = vmatprep.subr.bf16.mxu1 (!%p242_p9), %v840_v4  ;;  %v721_v24 = vpack.c.bf16 (!%p242_p9), %v371_v23, %v370_v22  ;;  %v373_v26 = vld [vmem:[%s1063_s3 + $0x58] sm:$0xff] (!%p242_p9)  ;;  %v374_v28 = vld [vmem:[%s1063_s3 + $0x60] sm:$0xff] (!%p242_p9)  ;;  %v375_v29 = vld [vmem:[%s1063_s3 + $0x68] sm:$0xff] (!%p242_p9)  ;;  %v465_v49 = vsub.s32 (!%p242_p9), 0, %v464_v48 }
  0x16   : > { %v724_v27 = vpack.c.bf16 (!%p242_p9), %v373_v26, %v372_v25  ;;  %v727_v30 = vpack.c.bf16 (!%p242_p9), %v375_v29, %v374_v28  ;;  %v376_v31 = vld [vmem:[%s1063_s3 + $0x70] sm:$0xff] (!%p242_p9)  ;;  %v377_v32 = vld [vmem:[%s1063_s3 + $0x78] sm:$0xff] (!%p242_p9)  ;;  %v619_v34 = vld [vmem:[%s1062_s2] ss:$0 sm:$0xff] (!%p242_p9) }
  0x17   : > { %707 = vmatpush3.bf16.msra.mxu0 (!%p242_p9), %v706_v13  ;;  %v730_v33 = vpack.c.bf16 (!%p242_p9), %v377_v32, %v376_v31  ;;  %v457_v39 = vld [vmem:[#allocation2] sm:$0x1] (!%p242_p9) }
  0x18   : > { %s272_s15 = scalar_select %p271_p10, %s909_s6, 1  ;;  %713 = vmatpush3.bf16.msra.mxu1 %v712_v14  ;;  %697 = vmatprep.subr.mxu0 %v842_v7  ;;  %v621_v41 = vld [vmem:[%s1064_s4] ss:$0 sm:$0xff] }
  0x19   : > { %714 = vmatprep.subr.bf16.mxu1 %v840_v4  ;;  %460 = vperm.xlu0 %775, %v457_v39   ;;  %v456_v46 = vld [vmem:[%s1065_s5] sm:$0x1]  ;;  %s844_s6 = smov [#allocation3]  }
  0x1a   : > { %s618_s16 = sshll.u32 %s272_s15, 3  ;;  %s780_s14 = sshll.u32 %s844_s6, 4  ;;  %s781_s14 = int_to_ptr.vmem [resolvable:$false] %s780_s14 }
  0x1b   : > { %s274_s23 = scalar_lea.vmem %s1060_s0, %s618_s16  ;;  %s782_s15 = scalar_lea.vmem %s781_s14, 32 }
  0x1c   : > { %v275_v17 = vld [vmem:[%s274_s23] sm:$0xff]  ;;  %716 = vmatpush3.bf16.msra.mxu1 %v715_v18  ;;  %s559_s23 = sshll.u32 %s270_s22, 4  ;;  %s1020_s23 = int_to_ptr.vmem [resolvable:$true] %s559_s23 }
  0x1d   : > { %660 = vmatmul.mubr.msk.f32.vlgmr.msra.gmra.mrb[0].mxu0 %vm287_vm1, %v275_v17  ;;  %717 = vmatprep.subr.bf16.mxu1 %v840_v4  ;;  %s776_s10 = scalar_lea.vmem %s1020_s23, 16  ;;  %p783_p0 = scmp.lt.s32.totalorder %s1020_s23, %s781_s14 }
  0x1e   : > { %699 = vmatprep.mubr.msk.f32.mxu0 %vm841_vm0, %v842_v7  ;;  %p777_p11 = scmp.ne.s32.totalorder %s1020_s23, %s776_s10  ;;  %p784_p1 = scmp.lt.s32.totalorder %s782_s15, %s776_s10 }
  0x20   : > { %719 = vmatpush3.bf16.msra.mxu1 %v718_v21  ;;  %p778_p12 = pnand %p777_p11, %p926_p5  ;;  %p785_p2 = por %p784_p1, %p783_p0 }
  0x21   : > { %720 = vmatprep.subr.bf16.mxu1 %v840_v4 }
  0x22   : > { %p779_p13 = pneg %p778_p12 }
  0x24   : > { %722 = vmatpush3.bf16.msra.mxu1 %v721_v24  ;;  %p786_p3 = pnand %p785_p2, %p779_p13 }
  0x25   : > { %723 = vmatprep.subr.bf16.mxu1 %v840_v4 }
  0x28   : > { %725 = vmatpush3.bf16.msra.mxu1 %v724_v27 }
  0x29   : > { %726 = vmatprep.subr.bf16.mxu1 %v840_v4 }
  0x2c   : > { %728 = vmatpush3.bf16.msra.mxu1 %v727_v30 }
  0x2d   : > { %729 = vmatprep.subr.bf16.mxu1 %v840_v4 }
  0x30   : > { %731 = vmatpush3.bf16.msra.mxu1 %v730_v33 }
  0x98   : > { %v461_v50 = vpop.permute.xlu0 %460 }
  0x99   : > { %v466_v51 = vrot.slane %v461_v50, %v465_v49 }
  0xf0   : > { %v357_v35 = vpop.f32.mrb[0].mxu0 }
  0xf1   : > { %v358_v36 = vadd.f32 %v619_v34, %v357_v35  ;;  %v661_v37 = vpop.f32.mrb[1].mxu0 }
  0xf3   : > { %v361_v38 = vmax.f32 %v358_v36, 0.0 }
  0xf5   : > { %695 = vmatmul.mubr.f32.vlgmr.msra.gmra.mrb[0].mxu1 %v361_v38 }
 0x1c8   : > { %v451_v42 = vpop.f32.mrb[0].mxu1 }
 0x1c9   : > { %v452_v43 = vadd.f32 %v621_v41, %v451_v42  ;;  %v696_v44 = vpop.f32.mrb[1].mxu1 }
 0x1cb   : > { %v455_v45 = vmax.f32 %v452_v43, 0.0 }
 0x1cd   : > { %698 = vmatpush3.xpose.msk.msra.mxu0 %vm467_vm2, %v455_v45 }
 0x1d0   : > { %700 = vmatmul.mubr.msk.f32.vlgmr.msra.gmra.mrb[2].mxu0 %vm467_vm2, %v456_v46 }
 0x2a3   : > { %v540_v52 = vpop.f32.mrb[2].mxu0 }
 0x2a4   : > { %v541_v53 = vadd.f32 %v540_v52, %v466_v51  ;;  %v701_v54 = vpop.f32.mrb[3].mxu0 }
 0x2a6   : > { %545 = vst.msk [vmem:[%s270_s22] sm:$0x1] %vm544_vm3, %v541_v53 }
 0x2a7   : > { %789 = shalt.err (!%p786_p3)
}
 0x2a8   : > { %s790_s16 = scalar_lea.hbm %s1018_s30, 16  ;;  %s794_s19 = scalar_lea.hbm %s1067_s7, 32 }
 0x2a9   : > { %p791_p4 = scmp.ne.s32.totalorder %s1018_s30, %s790_s16  ;;  %p795_p9 = scmp.lt.u32.totalorder %s1018_s30, %s1067_s7 }
 0x2aa   : > { %p796_p10 = scmp.lt.u32.totalorder %s794_s19, %s790_s16  ;;  %p798_p12 = scmp.lt.u32.totalorder %s790_s16, %s1018_s30 }
 0x2ab   : > { %p792_p7 = pnand %p791_p4, %p926_p5 }
 0x2ac   : > { %p797_p11 = por %p796_p10, %p795_p9 }
 0x2ad   : > { %p793_p8 = pneg %p792_p7 }
 0x2ae   : > { %p799_p13 = por %p798_p12, %p797_p11 }
 0x2b0   : > { %p800_p0 = pnand %p799_p13, %p793_p8 }
 0x2b2   : > { %803 = shalt.err (!%p800_p0)
}
 0x2b3   : > { %732 = dma.vmem_to_hbm [thread:$0]  (%p926_p5), %s1020_s23, 16, %s1018_s30, %s547_s9  }
 0x2b4 PF: > { %p738_p1 = scmp.ge.s32.totalorder %s838_s29, 2  ;;  %s571_s22 = sand.u32 1, %s826_s26  }
 0x2b5   : > { %s572_s24 = scalar_lea.sflag [#allocation4], %s571_s22 }
 0x2b6   : > { %p735_p2 = pnand %p738_p1, %p930_p6 }
 0x2b8   : > { %821 = dma.done.wait (!%p735_p2), %s572_s24, 16  }
 0x2b9   : > { %823 = vsyncadd (!%p735_p2), %s572_s24, 4294967280  ;;  %p19_p3 = scmp.ge.s32.totalorder %s913_s8, 4   ;;  %s1070_s26 = smov %s830_s27 }
 0x2ba   : > { %s1071_s27 = smov %s834_s28  ;;  %s1072_s28 = smov %s924_s11 }
 0x2bb   : > { %s1073_s29 = smov %s913_s8  ;;  %21 = sbr.rel (!%p19_p3) target bundleno = 6 (0x6), region = 83 }
 0x2c2   :  { %576 = vsyncpa [#allocation4], 1 }
 0x2c3   :  { %578 = vsyncpa [#allocation4 + $0x1], 1 }

</bundles_post_ra>
